<compile_context>
chip_gen: v7x
topology: tpu7x:2x2x1
jax: 0.10.0
libtpu: 0.0.40
codegen_flags: <defaults>
</compile_context>

<pallas_src>
import jax
import jax.numpy as jnp
from jax import lax
from jax.experimental import pallas as pl
from jax.experimental.pallas import tpu as pltpu

# ---- toy config (mirrors a small BertConfig) ---------------------------------
B, S, H = 2, 8, 32            # batch, seq_len, hidden_size
VOCAB = 128                   # vocab_size (word_embeddings, padding_idx=0)
MAX_POS = 64                  # max_position_embeddings
TYPE_VOCAB = 2                # type_vocab_size
LN_EPS = 1e-12                # layer_norm_eps


def _full_spec(shape):
    nd = len(shape)
    return pl.BlockSpec(shape, lambda i, _nd=nd: (0,) * _nd)


def bert_embedding(input_ids, token_type_ids, position_ids,
                   word_table, pos_table, type_table, gamma, beta):
    """Pallas implementation of BertEmbedding.forward (eval mode)."""
    b, s = input_ids.shape
    n_tok = b * s
    hsz = word_table.shape[1]

    # token-major flattening; (N, 1) so the id vector broadcasts along lanes.
    ids = input_ids.reshape(n_tok, 1).astype(jnp.int32)
    pos = position_ids.reshape(n_tok, 1).astype(jnp.int32)
    tok = token_type_ids.reshape(n_tok, 1).astype(jnp.int32)

    # Stack [word; position; token_type] tables: all three gathers plus their
    # sum become ONE one-hot matmul. bf16 is lossless here (table values are
    # bf16-representable) and halves weight DMA / VMEM bytes.
    off_pos = word_table.shape[0]
    off_tok = off_pos + pos_table.shape[0]
    stacked = jnp.concatenate([word_table, pos_table, type_table], axis=0)
    pad = (-stacked.shape[0]) % 8                      # sublane-align the table
    if pad:
        stacked = jnp.concatenate(
            [stacked, jnp.zeros((pad, hsz), stacked.dtype)], axis=0)
    stacked = stacked.astype(jnp.bfloat16)
    total_rows = stacked.shape[0]

    def kernel(ids_ref, pos_ref, tok_ref, table_ref, g_ref, b_ref, o_ref):
        # Fused gather: one-hot over the stacked table rows. Word / position /
        # token-type indices hit disjoint row ranges, so summing the three
        # one-hot masks and doing a single MXU matmul yields
        #   word_emb + pos_emb + type_emb   directly in (N, H) layout.
        iota = lax.broadcasted_iota(jnp.int32, (n_tok, total_rows), 1)
        onehot = (jnp.where(iota == ids_ref[...], 1.0, 0.0)
                  + jnp.where(iota == (pos_ref[...] + off_pos), 1.0, 0.0)
                  + jnp.where(iota == (tok_ref[...] + off_tok), 1.0, 0.0)
                  ).astype(jnp.bfloat16)
        emb = jnp.dot(onehot, table_ref[...],
                      preferred_element_type=jnp.float32)         # (N, H) f32

        # LayerNorm over H, in f32.
        mean = jnp.mean(emb, axis=-1, keepdims=True)
        xc = emb - mean
        var = jnp.mean(xc * xc, axis=-1, keepdims=True)
        y = xc * lax.rsqrt(var + LN_EPS) * g_ref[...] + b_ref[...]

        # dropout(hidden_dropout_prob) is the identity in eval mode.
        o_ref[...] = y.astype(o_ref.dtype)

    operands = (ids, pos, tok, stacked, gamma, beta)
    out = pl.pallas_call(
        kernel,
        out_shape=jax.ShapeDtypeStruct((n_tok, hsz), jnp.float32),
        grid_spec=pltpu.PrefetchScalarGridSpec(
            num_scalar_prefetch=0,
            grid=(1,),                                  # collapsed: one step
            in_specs=[_full_spec(x.shape) for x in operands],
            out_specs=_full_spec((n_tok, hsz)),
        ),
        compiler_params=pltpu.CompilerParams(dimension_semantics=("arbitrary",)),
    )(*operands)
    return out.reshape(b, s, hsz)


# ---- pure-JAX reference (module semantics, for correctness check) -------------
def _ref_bert_embedding(input_ids, token_type_ids, position_ids,
                        word_table, pos_table, type_table, gamma, beta):
    emb = (word_table[input_ids]
           + pos_table[position_ids]
           + type_table[token_type_ids])
    mean = emb.mean(-1, keepdims=True)
    var = ((emb - mean) ** 2).mean(-1, keepdims=True)
    return (emb - mean) * jax.lax.rsqrt(var + LN_EPS) * gamma[0] + beta[0]


# ---- main ---------------------------------------------------------------------
if __name__ == "__main__":
    key = jax.random.PRNGKey(0)
    kw, kp, kt, kg, kb, ki = jax.random.split(key, 6)

    def table(k, rows):
        t = jax.random.normal(k, (rows, H), jnp.float32) * 0.02
        # keep values bf16-representable so the bf16 MXU gather is exact
        return t.astype(jnp.bfloat16).astype(jnp.float32)

    word_table = table(kw, VOCAB).at[0].set(0.0)     # padding_idx=0 row = zeros
    pos_table = table(kp, MAX_POS)
    type_table = table(kt, TYPE_VOCAB)
    gamma = 1.0 + 0.1 * jax.random.normal(kg, (1, H), jnp.float32)
    beta = 0.1 * jax.random.normal(kb, (1, H), jnp.float32)

    input_ids = jax.random.randint(ki, (B, S), 1, VOCAB, dtype=jnp.int32)
    input_ids = input_ids.at[1, -2:].set(0)          # padded tail -> padding_idx
    token_type_ids = jnp.concatenate(
        [jnp.zeros((B, S // 2), jnp.int32), jnp.ones((B, S // 2), jnp.int32)],
        axis=1)
    # module default position_ids: arange(seq_len) expanded over the batch
    position_ids = jnp.broadcast_to(
        jnp.arange(S, dtype=jnp.int32)[None, :], (B, S))

    out = bert_embedding(input_ids, token_type_ids, position_ids,
                         word_table, pos_table, type_table, gamma, beta)
    out = jax.block_until_ready(out)

    ref = _ref_bert_embedding(input_ids, token_type_ids, position_ids,
                              word_table, pos_table, type_table, gamma, beta)
    assert out.shape == (B, S, H)
    max_err = float(jnp.max(jnp.abs(out - ref)))
    assert jnp.allclose(out, ref, rtol=1e-4, atol=1e-4), max_err
    print("KERNEL_OK")
</pallas_src>

<mosaic_0001>
module attributes {stable_mosaic.version = 11 : i64} {
  func.func @kernel(%arg0: i32, %arg1: memref<16x1xi32, #tpu.memory_space<vmem>>, %arg2: memref<16x1xi32, #tpu.memory_space<vmem>>, %arg3: memref<16x1xi32, #tpu.memory_space<vmem>>, %arg4: memref<200x32xbf16, #tpu.memory_space<vmem>>, %arg5: memref<1x32xf32, #tpu.memory_space<vmem>>, %arg6: memref<1x32xf32, #tpu.memory_space<vmem>>, %arg7: memref<16x32xf32, #tpu.memory_space<vmem>>) attributes {dimension_semantics = [#tpu.dimension_semantics<arbitrary>], iteration_bounds = array<i64: 1>, scalar_prefetch = 0 : i64, scratch_operands = 0 : i64, tpu.core_type = #tpu.core_type<tc>, window_params = [{pipeline_mode = #tpu.pipeline_mode<synchronous>, transform_indices = @transform_0, window_bounds = array<i64: 16, 1>}, {pipeline_mode = #tpu.pipeline_mode<synchronous>, transform_indices = @transform_1, window_bounds = array<i64: 16, 1>}, {pipeline_mode = #tpu.pipeline_mode<synchronous>, transform_indices = @transform_2, window_bounds = array<i64: 16, 1>}, {pipeline_mode = #tpu.pipeline_mode<synchronous>, transform_indices = @transform_3, window_bounds = array<i64: 200, 32>}, {pipeline_mode = #tpu.pipeline_mode<synchronous>, transform_indices = @transform_4, window_bounds = array<i64: 1, 32>}, {pipeline_mode = #tpu.pipeline_mode<synchronous>, transform_indices = @transform_5, window_bounds = array<i64: 1, 32>}, {pipeline_mode = #tpu.pipeline_mode<synchronous>, transform_indices = @transform_6, window_bounds = array<i64: 16, 32>}]} {
    %0 = tpu.iota {dimensions = array<i32: 1>} : vector<16x200xi32>
    %c0 = arith.constant 0 : index
    %c0_0 = arith.constant 0 : index
    %1 = vector.load %arg1[%c0, %c0_0] : memref<16x1xi32, #tpu.memory_space<vmem>>, vector<16x1xi32>
    %2 = vector.broadcast %1 : vector<16x1xi32> to vector<16x200xi32>
    %3 = arith.cmpi eq, %0, %2 : vector<16x200xi32>
    %cst = arith.constant 1.000000e+00 : f32
    %cst_1 = arith.constant 0.000000e+00 : f32
    %4 = vector.broadcast %cst : f32 to vector<16x200xf32>
    %5 = vector.broadcast %cst_1 : f32 to vector<16x200xf32>
    %6 = arith.select %3, %4, %5 : vector<16x200xi1>, vector<16x200xf32>
    %c0_2 = arith.constant 0 : index
    %c0_3 = arith.constant 0 : index
    %7 = vector.load %arg2[%c0_2, %c0_3] : memref<16x1xi32, #tpu.memory_space<vmem>>, vector<16x1xi32>
    %c128_i32 = arith.constant 128 : i32
    %8 = vector.broadcast %c128_i32 : i32 to vector<16x1xi32>
    %9 = arith.addi %7, %8 : vector<16x1xi32>
    %10 = vector.broadcast %9 : vector<16x1xi32> to vector<16x200xi32>
    %11 = arith.cmpi eq, %0, %10 : vector<16x200xi32>
    %cst_4 = arith.constant 1.000000e+00 : f32
    %cst_5 = arith.constant 0.000000e+00 : f32
    %12 = vector.broadcast %cst_4 : f32 to vector<16x200xf32>
    %13 = vector.broadcast %cst_5 : f32 to vector<16x200xf32>
    %14 = arith.select %11, %12, %13 : vector<16x200xi1>, vector<16x200xf32>
    %15 = arith.addf %6, %14 : vector<16x200xf32>
    %c0_6 = arith.constant 0 : index
    %c0_7 = arith.constant 0 : index
    %16 = vector.load %arg3[%c0_6, %c0_7] : memref<16x1xi32, #tpu.memory_space<vmem>>, vector<16x1xi32>
    %c192_i32 = arith.constant 192 : i32
    %17 = vector.broadcast %c192_i32 : i32 to vector<16x1xi32>
    %18 = arith.addi %16, %17 : vector<16x1xi32>
    %19 = vector.broadcast %18 : vector<16x1xi32> to vector<16x200xi32>
    %20 = arith.cmpi eq, %0, %19 : vector<16x200xi32>
    %cst_8 = arith.constant 1.000000e+00 : f32
    %cst_9 = arith.constant 0.000000e+00 : f32
    %21 = vector.broadcast %cst_8 : f32 to vector<16x200xf32>
    %22 = vector.broadcast %cst_9 : f32 to vector<16x200xf32>
    %23 = arith.select %20, %21, %22 : vector<16x200xi1>, vector<16x200xf32>
    %24 = arith.addf %15, %23 : vector<16x200xf32>
    %25 = arith.truncf %24 : vector<16x200xf32> to vector<16x200xbf16>
    %c0_10 = arith.constant 0 : index
    %c0_11 = arith.constant 0 : index
    %26 = vector.load %arg4[%c0_10, %c0_11] : memref<200x32xbf16, #tpu.memory_space<vmem>>, vector<200x32xbf16>
    %cst_12 = arith.constant dense<0.000000e+00> : vector<16x32xf32>
    %27 = tpu.matmul %25, %26, %cst_12 {dimension_numbers = #tpu.dot_dimension_numbers<[1], [0], [0], [1], [0, 0, 1, 1], [], []>} : vector<16x200xbf16>, vector<200x32xbf16>, vector<16x32xf32> -> vector<16x32xf32>
    %cst_13 = arith.constant dense<0.000000e+00> : vector<16xf32>
    %28 = vector.multi_reduction <add>, %27, %cst_13 [1] : vector<16x32xf32> to vector<16xf32>
    %29 = vector.shape_cast %28 : vector<16xf32> to vector<16x1xf32>
    %cst_14 = arith.constant 3.200000e+01 : f32
    %30 = vector.broadcast %cst_14 : f32 to vector<16x1xf32>
    %31 = arith.divf %29, %30 : vector<16x1xf32>
    %32 = vector.broadcast %31 : vector<16x1xf32> to vector<16x32xf32>
    %33 = arith.subf %27, %32 : vector<16x32xf32>
    %34 = arith.mulf %33, %33 : vector<16x32xf32>
    %cst_15 = arith.constant dense<0.000000e+00> : vector<16xf32>
    %35 = vector.multi_reduction <add>, %34, %cst_15 [1] : vector<16x32xf32> to vector<16xf32>
    %36 = vector.shape_cast %35 : vector<16xf32> to vector<16x1xf32>
    %cst_16 = arith.constant 3.200000e+01 : f32
    %37 = vector.broadcast %cst_16 : f32 to vector<16x1xf32>
    %38 = arith.divf %36, %37 : vector<16x1xf32>
    %cst_17 = arith.constant 9.99999996E-13 : f32
    %39 = vector.broadcast %cst_17 : f32 to vector<16x1xf32>
    %40 = arith.addf %38, %39 : vector<16x1xf32>
    %41 = math.rsqrt %40 : vector<16x1xf32>
    %42 = vector.broadcast %41 : vector<16x1xf32> to vector<16x32xf32>
    %43 = arith.mulf %33, %42 : vector<16x32xf32>
    %c0_18 = arith.constant 0 : index
    %c0_19 = arith.constant 0 : index
    %44 = vector.load %arg5[%c0_18, %c0_19] : memref<1x32xf32, #tpu.memory_space<vmem>>, vector<1x32xf32>
    %45 = vector.broadcast %44 : vector<1x32xf32> to vector<16x32xf32>
    %46 = arith.mulf %43, %45 : vector<16x32xf32>
    %c0_20 = arith.constant 0 : index
    %c0_21 = arith.constant 0 : index
    %47 = vector.load %arg6[%c0_20, %c0_21] : memref<1x32xf32, #tpu.memory_space<vmem>>, vector<1x32xf32>
    %48 = vector.broadcast %47 : vector<1x32xf32> to vector<16x32xf32>
    %49 = arith.addf %46, %48 : vector<16x32xf32>
    %c0_22 = arith.constant 0 : index
    %c0_23 = arith.constant 0 : index
    %50 = vector.load %arg7[%c0_22, %c0_23] : memref<16x32xf32, #tpu.memory_space<vmem>>, vector<16x32xf32>
    tpu.vector_store %arg7[%c0_22, %c0_23], %49 {strides = array<i32>} : memref<16x32xf32, #tpu.memory_space<vmem>>, vector<16x32xf32>,
    return
  }
  func.func @transform_0(%arg0: i32) -> (i32, i32) {
    %c0_i32 = arith.constant 0 : i32
    %c0_i32_0 = arith.constant 0 : i32
    %c0_i32_1 = arith.constant 0 : i32
    return %c0_i32, %c0_i32_0 : i32, i32
  }
  func.func @transform_1(%arg0: i32) -> (i32, i32) {
    %c0_i32 = arith.constant 0 : i32
    %c0_i32_0 = arith.constant 0 : i32
    %c0_i32_1 = arith.constant 0 : i32
    return %c0_i32, %c0_i32_0 : i32, i32
  }
  func.func @transform_2(%arg0: i32) -> (i32, i32) {
    %c0_i32 = arith.constant 0 : i32
    %c0_i32_0 = arith.constant 0 : i32
    %c0_i32_1 = arith.constant 0 : i32
    return %c0_i32, %c0_i32_0 : i32, i32
  }
  func.func @transform_3(%arg0: i32) -> (i32, i32) {
    %c0_i32 = arith.constant 0 : i32
    %c0_i32_0 = arith.constant 0 : i32
    %c0_i32_1 = arith.constant 0 : i32
    return %c0_i32, %c0_i32_0 : i32, i32
  }
  func.func @transform_4(%arg0: i32) -> (i32, i32) {
    %c0_i32 = arith.constant 0 : i32
    %c0_i32_0 = arith.constant 0 : i32
    %c0_i32_1 = arith.constant 0 : i32
    return %c0_i32, %c0_i32_0 : i32, i32
  }
  func.func @transform_5(%arg0: i32) -> (i32, i32) {
    %c0_i32 = arith.constant 0 : i32
    %c0_i32_0 = arith.constant 0 : i32
    %c0_i32_1 = arith.constant 0 : i32
    return %c0_i32, %c0_i32_0 : i32, i32
  }
  func.func @transform_6(%arg0: i32) -> (i32, i32) {
    %c0_i32 = arith.constant 0 : i32
    %c0_i32_0 = arith.constant 0 : i32
    %c0_i32_1 = arith.constant 0 : i32
    return %c0_i32, %c0_i32_0 : i32, i32
  }
}

</mosaic_0001>

<bundles_post_ra>
// kernel: tpu_custom_call.1
= control target key start
LH: loop header
LB: loop body
LE: loop exit
PB: predicated region body
PF: predicated region fallthrough
CT: control target
= control target key end

     0   :  { %v367_v2 = vmov 0   ;;  %s488_s0 = inlined_call_operand.vmem [shape: s32[16,1], index: 0, kind: input, shape index: {}]   ;;  %s489_s1 = inlined_call_operand.vmem [shape: s32[16,1], index: 1, kind: input, shape index: {}]   ;;  %s490_s2 = inlined_call_operand.vmem [shape: s32[16,1], index: 2, kind: input, shape index: {}]   ;;  %s491_s3 = inlined_call_operand.vmem [shape: bf16[200,32], index: 3, kind: input, shape index: {}]   ;;  %s492_s4 = inlined_call_operand.vmem [shape: f32[1,32], index: 4, kind: input, shape index: {}]   ;;  %s493_s5 = inlined_call_operand.vmem [shape: f32[1,32], index: 5, kind: input, shape index: {}]   ;;  %s494_s6 = inlined_call_operand.hbm [shape: f32[16,32], index: 6, kind: output, shape index: {}]  }
   0x1   :  { %v28_v0 = vld [vmem:[%s488_s0] sm:$0xff]  ;;  %324 = vset.pattern.permute.xlu0 %v367_v2  ;;  %325 = vset.pattern.permute.xlu1 %v367_v2  ;;  %v29_v4 = vld [vmem:[%s488_s0 + $0x8] sm:$0xff]  ;;  %v328_v13 = vld [vmem:[%s491_s3 + $0x10] sm:$0xff]  }
   0x2   :  { %v44_v1 = vld [vmem:[%s489_s1] sm:$0xff]  ;;  %v45_v5 = vld [vmem:[%s489_s1 + $0x8] sm:$0xff]  ;;  %31 = vperm.xlu0 %324, %v28_v0   ;;  %198 = vmatprep.subr.bf16.mxu0 %v367_v2  ;;  %v329_v14 = vld [vmem:[%s491_s3 + $0x18] sm:$0xff]  }
   0x3   :  { %v46_v3 = vadd.s32 128, %v44_v1  ;;  %v66_v6 = vld [vmem:[%s490_s2] sm:$0xff]  ;;  %v47_v7 = vadd.s32 128, %v45_v5  ;;  %v67_v8 = vld [vmem:[%s490_s2 + $0x8] sm:$0xff] }
   0x4   :  { %v326_v9 = vld [vmem:[%s491_s3] sm:$0xff]   ;;  %v327_v10 = vld [vmem:[%s491_s3 + $0x8] sm:$0xff]   ;;  %v68_v11 = vadd.s32 192, %v66_v6  ;;  %v69_v12 = vadd.s32 192, %v67_v8 }
   0x5   :  { %49 = vperm.xlu1 %325, %v46_v3   ;;  %199 = vmatpush1.bf16.msra.mxu0 %v326_v9 }
   0x6   :  { %200 = vmatprep.subr.bf16.mxu0 %v367_v2  ;;  %34 = vperm.xlu0 %324, %v29_v4  }
   0x9   :  { %52 = vperm.xlu1 %325, %v47_v7   ;;  %201 = vmatpush1.bf16.msra.mxu0 %v327_v10 }
   0xa   :  { %202 = vmatprep.subr.bf16.mxu0 %v367_v2  ;;  %71 = vperm.xlu0 %324, %v68_v11  }
   0xd   :  { %74 = vperm.xlu1 %325, %v69_v12   ;;  %203 = vmatpush1.bf16.msra.mxu0 %v328_v13 }
   0xe   :  { %204 = vmatprep.subr.bf16.mxu0 %v367_v2 }
   0xf   :  { %11 = vsyncpa [#allocation3], 0  ;;  %v330_v15 = vld [vmem:[%s491_s3 + $0x20] sm:$0xff]   ;;  %v331_v16 = vld [vmem:[%s491_s3 + $0x28] sm:$0xff]   ;;  %vm194_vm0 = vcmask 1043456   ;;  %v25_v25 = vlaneseq  ;;  %v368_v30 = vmov 0.0  }
  0x10   :  { %v332_v17 = vld [vmem:[%s491_s3 + $0x30] sm:$0xff]   ;;  %v333_v18 = vld [vmem:[%s491_s3 + $0x38] sm:$0xff]   ;;  %v334_v19 = vld [vmem:[%s491_s3 + $0x40] sm:$0xff]   ;;  %vm190_vm13 = vcmask 588800   ;;  %vm239_vm14 = vcmask 261120   ;;  %s369_s0 = smov [#allocation2]  }
  0x11   :  { %205 = vmatpush1.bf16.msra.mxu0 %v329_v14  ;;  %v335_v20 = vld [vmem:[%s491_s3 + $0x48] sm:$0xff]   ;;  %v336_v21 = vld [vmem:[%s491_s3 + $0x50] sm:$0xff]   ;;  %v337_v22 = vld [vmem:[%s491_s3 + $0x58] sm:$0xff]   ;;  %v26_v26 = vand.u32 127, %v25_v25  ;;  %s292_s11 = sshll.u32 %s369_s0, 4  ;;  %s293_s11 = int_to_ptr.vmem [resolvable:$true] %s292_s11 }
  0x12   :  { %206 = vmatprep.subr.bf16.mxu0 %v367_v2  ;;  %v338_v23 = vld [vmem:[%s491_s3 + $0x60] ss:$0 sps:$4 sm:$0xff]   ;;  %s343_s1 = scalar_lea.vmem %s293_s11, 256  ;;  %p348_p1 = scmp.lt.s32.totalorder %s293_s11, %s293_s11 }
  0x13   :  { %v196_v24 = vsel %vm194_vm0, %v338_v23, 0  ;;  %v27_v27 = vadd.s32 128, %v26_v26  ;;  %p344_p0 = scmp.ne.s32.totalorder %s293_s11, %s343_s1  ;;  %p349_p2 = scmp.lt.s32.totalorder %s343_s1, %s343_s1 }
  0x15   :  { %207 = vmatpush1.bf16.msra.mxu0 %v330_v15  ;;  %p350_p3 = por %p349_p2, %p348_p1 }
  0x16   :  { %208 = vmatprep.subr.bf16.mxu0 %v367_v2 }
  0x17   :  { %p351_p4 = pnand %p350_p3, %p344_p0 }
  0x19   :  { %209 = vmatpush1.bf16.msra.mxu0 %v331_v16  ;;  %v317_v16 = vld [vmem:[%s492_s4] ss:$0 sm:$0xff] }
  0x1a   :  { %210 = vmatprep.subr.bf16.mxu0 %v367_v2 }
  0x1d   :  { %211 = vmatpush1.bf16.msra.mxu0 %v332_v17 }
  0x1e   :  { %212 = vmatprep.subr.bf16.mxu0 %v367_v2 }
  0x21   :  { %213 = vmatpush1.bf16.msra.mxu0 %v333_v18  ;;  %v318_v18 = vld [vmem:[%s493_s5] ss:$0 sm:$0xff] }
  0x22   :  { %214 = vmatprep.subr.bf16.mxu0 %v367_v2 }
  0x25   :  { %215 = vmatpush1.bf16.msra.mxu0 %v334_v19 }
  0x26   :  { %216 = vmatprep.subr.bf16.mxu0 %v367_v2 }
  0x29   :  { %217 = vmatpush1.bf16.msra.mxu0 %v335_v20 }
  0x2a   :  { %218 = vmatprep.subr.bf16.mxu0 %v367_v2 }
  0x2d   :  { %219 = vmatpush1.bf16.msra.mxu0 %v336_v21 }
  0x2e   :  { %220 = vmatprep.subr.bf16.mxu0 %v367_v2 }
  0x31   :  { %221 = vmatpush1.bf16.msra.mxu0 %v337_v22 }
  0x32   :  { %222 = vmatprep.subr.bf16.mxu0 %v367_v2 }
  0x35   :  { %223 = vmatpush1.bf16.msra.mxu0 %v196_v24 }
  0x81   :  { %v32_v28 = vpop.permute.xlu0 %31 }
  0x82   :  { %vm36_vm1 = vcmp.eq.s32.totalorder %v26_v26, %v32_v28  ;;  %vm37_vm2 = vcmp.eq.s32.totalorder %v27_v27, %v32_v28 }
  0x83   :  { %v40_v31 = vsel %vm36_vm1, 1.0, %v368_v30  ;;  %v41_v32 = vsel %vm37_vm2, 1.0, %v368_v30 }
  0x84   :  { %v50_v29 = vpop.permute.xlu1 %49 }
  0x85   :  { %vm54_vm3 = vcmp.eq.s32.totalorder %v26_v26, %v50_v29  ;;  %vm55_vm4 = vcmp.eq.s32.totalorder %v27_v27, %v50_v29  ;;  %v35_v33 = vpop.permute.xlu0 %34 }
  0x86   :  { %v58_v34 = vsel %vm54_vm3, 1.0, %v368_v30  ;;  %v59_v35 = vsel %vm55_vm4, 1.0, %v368_v30  ;;  %vm38_vm5 = vcmp.eq.s32.totalorder %v26_v26, %v35_v33  ;;  %vm39_vm6 = vcmp.eq.s32.totalorder %v27_v27, %v35_v33 }
  0x87   :  { %v42_v37 = vsel %vm38_vm5, 1.0, %v368_v30  ;;  %v43_v38 = vsel %vm39_vm6, 1.0, %v368_v30  ;;  %v62_v41 = vadd.f32 %v58_v34, %v40_v31  ;;  %v63_v42 = vadd.f32 %v59_v35, %v41_v32 }
  0x88   :  { %v53_v36 = vpop.permute.xlu1 %52 }
  0x89   :  { %vm56_vm7 = vcmp.eq.s32.totalorder %v26_v26, %v53_v36  ;;  %vm57_vm8 = vcmp.eq.s32.totalorder %v27_v27, %v53_v36  ;;  %v72_v43 = vpop.permute.xlu0 %71 }
  0x8a   :  { %v60_v39 = vsel %vm56_vm7, 1.0, %v368_v30  ;;  %v61_v40 = vsel %vm57_vm8, 1.0, %v368_v30  ;;  %vm76_vm9 = vcmp.eq.s32.totalorder %v26_v26, %v72_v43  ;;  %vm77_vm10 = vcmp.eq.s32.totalorder %v27_v27, %v72_v43 }
  0x8b   :  { %v64_v44 = vadd.f32 %v60_v39, %v42_v37  ;;  %v65_v45 = vadd.f32 %v61_v40, %v43_v38  ;;  %v80_v47 = vsel %vm76_vm9, 1.0, %v368_v30  ;;  %v81_v48 = vsel %vm77_vm10, 1.0, %v368_v30 }
  0x8c   :  { %v75_v46 = vpop.permute.xlu1 %74  ;;  %v84_v49 = vadd.f32 %v80_v47, %v62_v41  ;;  %v85_v52 = vadd.f32 %v81_v48, %v63_v42 }
  0x8d   :  { %vm78_vm11 = vcmp.eq.s32.totalorder %v26_v26, %v75_v46  ;;  %vm79_vm12 = vcmp.eq.s32.totalorder %v27_v27, %v75_v46 }
  0x8e   :  { %v82_v50 = vsel %vm78_vm11, 1.0, %v368_v30  ;;  %v83_v51 = vsel %vm79_vm12, 1.0, %v368_v30 }
  0x8f   :  { %v86_v53 = vadd.f32 %v82_v50, %v64_v44  ;;  %v87_v54 = vadd.f32 %v83_v51, %v65_v45 }
  0x91   :  { %v89_v55 = vpack.c.bf16 %v87_v54, %v85_v52  ;;  %v88_v56 = vpack.c.bf16 %v86_v53, %v84_v49 }
  0x93   :  { %316 = vmatprep.mubr.msk.bf16.mxu0 %vm190_vm13, %v89_v55 }
  0x94   :  { %231 = vmatmul.mubr.bf16.vlgmr.msra.gmra.mrb[0].mxu0 %v88_v56 }
 0x167   :  { %v232_v57 = vpop.f32.mrb[0].mxu0 }
 0x168   :  { %v234_v58 = vpop.f32.mrb[1].mxu0  ;;  %v240_v59 = vsel %vm239_vm14, %v232_v57, 0.0 }
 0x169   :  { %241 = vadd.xlane.f32.xlu0 %v240_v59  ;;  %v235_v60 = vpop.f32.mrb[2].mxu0 }
 0x16a   :  { %v237_v61 = vpop.f32.mrb[3].mxu0  ;;  %v243_v62 = vsel %vm239_vm14, %v235_v60, 0.0 }
 0x16b   :  { %244 = vadd.xlane.f32.xlu1 %v243_v62 }
 0x1f6   :  { %v242_v63 = vpop.xlane.xlu0 %241 }
 0x1f7   :  { %v247_v0 = vmul.f32 0.03125, %v242_v63 }
 0x1f8   :  { %v245_v1 = vpop.xlane.xlu1 %244 }
 0x1f9   :  { %v249_v2 = vsub.f32 %v232_v57, %v247_v0  ;;  %v248_v3 = vmul.f32 0.03125, %v245_v1 }
 0x1fb   :  { %v250_v4 = vsub.f32 %v235_v60, %v248_v3  ;;  %v251_v5 = vmul.f32 %v249_v2, %v249_v2 }
 0x1fd   :  { %v253_v6 = vsel %vm239_vm14, %v251_v5, 0.0  ;;  %v252_v7 = vmul.f32 %v250_v4, %v250_v4 }
 0x1fe   :  { %254 = vadd.xlane.f32.xlu0 %v253_v6 }
 0x1ff   :  { %v256_v8 = vsel %vm239_vm14, %v252_v7, 0.0 }
 0x202   :  { %257 = vadd.xlane.f32.xlu0 %v256_v8 }
 0x28b   :  { %v255_v9 = vpop.xlane.xlu0 %254 }
 0x28c   :  { %v259_v10 = vmul.f32 0.03125, %v255_v9 }
 0x28e   :  { %v261_v11 = vadd.f32 1e-12, %v259_v10 }
 0x28f   :  { %v258_v12 = vpop.xlane.xlu0 %257 }
 0x290   :  { %339 = vrsqrt.f32 %v261_v11  ;;  %v260_v13 = vmul.f32 0.03125, %v258_v12 }
 0x292   :  { %v262_v14 = vadd.f32 1e-12, %v260_v13 }
 0x294   :  { %341 = vrsqrt.f32 %v262_v14 }
 0x29a   :  { %v340_v15 = vpop.eup %339 }
 0x29b   :  { %v265_v17 = vmul.f32 %v340_v15, %v249_v2 }
 0x29d   :  { %v274_v19 = vmul.f32 %v317_v16, %v265_v17 }
 0x29e   :  { %v342_v20 = vpop.eup %341 }
 0x29f   :  { %v266_v21 = vmul.f32 %v342_v20, %v250_v4  ;;  %v283_v22 = vadd.f32 %v318_v18, %v274_v19 }
 0x2a1   :  { %v275_v23 = vmul.f32 %v317_v16, %v266_v21  ;;  %285 = vst.msk [vmem:[#allocation2] sm:$0xff] %vm239_vm14, %v283_v22 }
 0x2a3   :  { %v284_v24 = vadd.f32 %v318_v18, %v275_v23 }
 0x2a5   :  { %286 = vst.msk [vmem:[#allocation2 + $0x8] sm:$0xff] %vm239_vm14, %v284_v24 }
 0x2a6   :  { %354 = shalt.err (!%p351_p4)
}
 0x2a7   :  { %s355_s12 = scalar_lea.hbm %s494_s6, 256 }
 0x2a8   :  { %p356_p5 = scmp.ne.s32.totalorder %s494_s6, %s355_s12  ;;  %p359_p6 = scmp.lt.u32.totalorder %s355_s12, %s494_s6 }
 0x2aa   :  { %p361_p7 = pnand %p359_p6, %p356_p5 }
 0x2ac   :  { %364 = shalt.err (!%p361_p7)
}
 0x2ad   :  { %s370_s16 = smov 128   ;;  %s371_s17 = smov 8  }
 0x2ae   :  { %298 = dma.vmem_to_hbm [thread:$0]  %s293_s11, 256, %s494_s6, [#allocation3], %s370_s16, %s370_s16, %s371_s17  }
 0x2af   :  { %365 = dma.done.wait [#allocation3], 256  }
 0x2b0   :  { %366 = vsyncadd [#allocation3], 4294967040 }
 0x2b1   :  { %302 = vsyncpa [#allocation3], 1 }

</bundles_post_ra>
